<compile_context>
chip_gen: v7x
topology: tpu7x:2x2x1
jax: 0.10.0
libtpu: 0.0.40
codegen_flags: <defaults>
</compile_context>

<pallas_src>
import jax
import jax.numpy as jnp
from jax.experimental import pallas as pl
from jax.experimental.pallas import tpu as pltpu

LN_EPS = 1e-5

# Row indices inside the packed (8, S) parameter slab (rows 6, 7 are padding).
_B1, _G1, _BE1, _B2, _G2, _BE2 = 0, 1, 2, 3, 4, 5


def _layernorm(h, gamma, beta):
    # Fused-affine LayerNorm with one-pass variance: mean(h) and mean(h*h) are
    # independent reductions; affine is fused as (h - mu) * (gamma * inv) + beta.
    mu = jnp.mean(h, axis=-1, keepdims=True)
    var = jnp.maximum(jnp.mean(h * h, axis=-1, keepdims=True) - mu * mu, 0.0)
    inv = jax.lax.rsqrt(var + LN_EPS)
    return (h - mu) * (gamma * inv) + beta


def token_decoder_mlp_kernel(x_ref, w1_ref, w2_ref, p_ref, o_ref):
    x = x_ref[...]                                   # [TB, D_in] bf16 (streamed)
    p = p_ref[...]                                   # [8, S]     f32  (resident)
    b1, g1, be1 = p[_B1:_B1 + 1], p[_G1:_G1 + 1], p[_BE1:_BE1 + 1]
    b2, g2, be2 = p[_B2:_B2 + 1], p[_G2:_G2 + 1], p[_BE2:_BE2 + 1]

    # Layer 1: Linear (bf16 MXU operands, f32 accumulate) -> LayerNorm -> ReLU.
    h = jnp.dot(x, w1_ref[...], preferred_element_type=jnp.float32) + b1
    h = jnp.maximum(_layernorm(h, g1, be1), 0.0)

    # Layer 2: Linear -> LayerNorm -> ReLU (activate_last=True).
    h = jnp.dot(h.astype(jnp.bfloat16), w2_ref[...],
                preferred_element_type=jnp.float32) + b2
    h = jnp.maximum(_layernorm(h, g2, be2), 0.0)

    # NOTE: rows beyond B in the (padded) edge tile carry garbage through LN; they are
    # row-local and never written back to the (B, S) output, so they cannot pollute results.
    o_ref[...] = h


def _round_up(x, m):
    return ((x + m - 1) // m) * m


def _vmem_capacity_bytes():
    # Per-generation physical VMEM (64 MiB/TC on v7x, 128 MiB on v5e/v6e).
    try:
        return int(pltpu.get_tpu_info().vmem_capacity_bytes)
    except Exception:
        return 64 << 20   # conservative default (v7x per-TensorCore)


def _choose_tb(batch, block_b):
    # Multiple of 16 (bf16 sublane pack); prefer >= 2 batch tiles when batch allows so the
    # "parallel" grid axis can shard across both TensorCores on v7x.
    if batch <= 16:
        return 16
    half = _round_up(pl.cdiv(batch, 2), 16)
    return max(16, min(block_b, half, _round_up(batch, 16)))


def _xla_forward(x, w1, b1, g1, be1, w2, b2, g2, be2):
    # Same math as the kernel (bf16 matmul operands, f32 accumulate / epilogue).
    h = jnp.dot(x.astype(jnp.bfloat16), w1.astype(jnp.bfloat16),
                preferred_element_type=jnp.float32) + b1
    h = jnp.maximum(_layernorm(h, g1, be1), 0.0)
    h = jnp.dot(h.astype(jnp.bfloat16), w2.astype(jnp.bfloat16),
                preferred_element_type=jnp.float32) + b2
    h = jnp.maximum(_layernorm(h, g2, be2), 0.0)
    return h


def token_decoder_mlp(value_tokens, params, num_query_tokens, embed_size,
                      *, block_b=256, force_pallas=False):
    """value_tokens: [B, num_tokens, embed_size] -> [B, num_query_tokens, embed_size]."""
    B, T, E = value_tokens.shape
    d_in = T * E
    s = num_query_tokens * embed_size

    w1, b1, g1, be1, w2, b2, g2, be2 = params
    x = value_tokens.reshape(B, d_in)

    tb = _choose_tb(B, block_b)
    grid = (pl.cdiv(B, tb),)

    # VMEM economics: single-buffered resident weights + double-buffered streamed tiles.
    resident = (d_in * s + s * s) * 2 + 8 * s * 4         # bf16 W1/W2 + f32 packed params
    streamed = 2 * (tb * d_in * 2 + tb * s * 4)           # bf16 x tile, f32 out tile (x2 bufs)
    headroom = 4 << 20
    budget = _vmem_capacity_bytes() - (8 << 20)
    weights_fit = (resident + streamed + headroom) <= budget

    flops = 2 * B * (d_in * s + s * s)
    tiny = flops < (1 << 27)   # below ~128 MFLOP fixed Pallas/DMA overhead dominates

    if (not weights_fit) or (tiny and not force_pallas):
        # TODO(synk): implement an N-tiled / two-pass (accumulate-then-LayerNorm) Pallas
        # path for W2 exceeding the per-TC VMEM budget (v7x = 64 MiB); until then XLA
        # handles that regime (and trivially-small problems) with identical math.
        out = _xla_forward(x, w1, b1, g1, be1, w2, b2, g2, be2)
        return out.reshape(B, num_query_tokens, embed_size)

    # bf16 streamed input + bf16 weights (native MXU path, half the HBM/VMEM bytes).
    x_bf = x.astype(jnp.bfloat16)
    w1_bf = w1.astype(jnp.bfloat16)
    w2_bf = w2.astype(jnp.bfloat16)

    # Pack the six [1, S] vectors into one (8, S) slab: one DMA / one (8,128)-aligned tile.
    packed = jnp.zeros((8, s), jnp.float32)
    for row, v in ((_B1, b1), (_G1, g1), (_BE1, be1), (_B2, b2), (_G2, g2), (_BE2, be2)):
        packed = packed.at[row].set(v.reshape(-1))

    cost = pl.CostEstimate(
        flops=flops,
        transcendentals=0,
        bytes_accessed=(B * d_in * 2 + (d_in * s + s * s) * 2 + 8 * s * 4 + B * s * 4))

    def run(single_buffer_weights):
        if single_buffer_weights:
            resident_specs = [
                pl.BlockSpec((d_in, s), lambda i: (0, 0), pipeline_mode=pl.Buffered(1)),
                pl.BlockSpec((s, s), lambda i: (0, 0), pipeline_mode=pl.Buffered(1)),
                pl.BlockSpec((8, s), lambda i: (0, 0), pipeline_mode=pl.Buffered(1)),
            ]
            res_bytes = resident
        else:
            resident_specs = [
                pl.BlockSpec((d_in, s), lambda i: (0, 0)),
                pl.BlockSpec((s, s), lambda i: (0, 0)),
                pl.BlockSpec((8, s), lambda i: (0, 0)),
            ]
            res_bytes = 2 * resident
        vmem_limit = int(min(max(res_bytes + streamed + headroom, 16 << 20), budget))
        return pl.pallas_call(
            token_decoder_mlp_kernel,
            out_shape=jax.ShapeDtypeStruct((B, s), jnp.float32),
            grid=grid,
            in_specs=[pl.BlockSpec((tb, d_in), lambda i: (i, 0))] + resident_specs,
            out_specs=pl.BlockSpec((tb, s), lambda i: (i, 0)),
            compiler_params=pltpu.CompilerParams(
                dimension_semantics=("parallel",),
                vmem_limit_bytes=vmem_limit),
            cost_estimate=cost,
        )(x_bf, w1_bf, w2_bf, packed)

    try:
        out_flat = jax.block_until_ready(run(True))
    except Exception:
        # pl.Buffered(1) unsupported by this jax/Mosaic build: retry with default
        # double-buffering (identical semantics, just more resident VMEM).
        out_flat = run(False)

    return out_flat.reshape(B, num_query_tokens, embed_size)


def reference_forward(value_tokens, params, num_query_tokens, embed_size):
    """Pure-JAX reference mirroring the kernel's bf16 matmul / f32 epilogue path."""
    B, T, E = value_tokens.shape
    x = value_tokens.reshape(B, T * E)
    return _xla_forward(x, *params).reshape(B, num_query_tokens, embed_size)


def init_params(key, d_in, s):
    """Deterministic synthetic parameters (shapes match the PyTorch module)."""
    ks = jax.random.split(key, 8)
    scale1 = 1.0 / jnp.sqrt(d_in)
    scale2 = 1.0 / jnp.sqrt(s)
    w1 = jax.random.uniform(ks[0], (d_in, s), jnp.float32, -scale1, scale1)
    b1 = jax.random.uniform(ks[1], (1, s), jnp.float32, -scale1, scale1)
    g1 = 1.0 + 0.05 * jax.random.normal(ks[2], (1, s), jnp.float32)
    be1 = 0.05 * jax.random.normal(ks[3], (1, s), jnp.float32)
    w2 = jax.random.uniform(ks[4], (s, s), jnp.float32, -scale2, scale2)
    b2 = jax.random.uniform(ks[5], (1, s), jnp.float32, -scale2, scale2)
    g2 = 1.0 + 0.05 * jax.random.normal(ks[6], (1, s), jnp.float32)
    be2 = 0.05 * jax.random.normal(ks[7], (1, s), jnp.float32)
    return (w1, b1, g1, be1, w2, b2, g2, be2)


if __name__ == "__main__":
    # Config: decoder_type='mlp', norm='ln', res_link=False, cond_dim=0,
    #         num_tokens=8, embed_size=32, num_query_tokens=4.
    batch = 2
    num_tokens = 8
    embed_size = 32
    num_query_tokens = 4

    d_in = num_tokens * embed_size                 # 256
    s = num_query_tokens * embed_size              # 128

    key = jax.random.PRNGKey(0)
    k_x, k_p = jax.random.split(key)
    value_tokens = jax.random.normal(k_x, (batch, num_tokens, embed_size), jnp.float32)
    params = init_params(k_p, d_in, s)

    # force_pallas=True so the Pallas kernel is exercised even at these toy sizes
    # (the wrapper would otherwise dispatch such small problems straight to XLA).
    out = token_decoder_mlp(value_tokens, params, num_query_tokens, embed_size,
                            force_pallas=True)
    out = jax.block_until_ready(out)

    ref = reference_forward(value_tokens, params, num_query_tokens, embed_size)
    assert out.shape == (batch, num_query_tokens, embed_size), out.shape
    assert jnp.allclose(out, ref, atol=1e-2, rtol=1e-2), float(jnp.max(jnp.abs(out - ref)))

    print("KERNEL_OK")
</pallas_src>

<mosaic_0001>
module attributes {stable_mosaic.version = 11 : i64} {
  func.func @token_decoder_mlp_kernel(%arg0: i32, %arg1: memref<16x256xbf16, #tpu.memory_space<vmem>>, %arg2: memref<256x128xbf16, #tpu.memory_space<vmem>>, %arg3: memref<128x128xbf16, #tpu.memory_space<vmem>>, %arg4: memref<8x128xf32, #tpu.memory_space<vmem>>, %arg5: memref<16x128xf32, #tpu.memory_space<vmem>>) attributes {dimension_semantics = [#tpu.dimension_semantics<parallel>], iteration_bounds = array<i64: 1>, scalar_prefetch = 0 : i64, scratch_operands = 0 : i64, tpu.core_type = #tpu.core_type<tc>, window_params = [{transform_indices = @transform_0, window_bounds = array<i64: 16, 256>}, {pipeline_mode = #tpu.pipeline_mode<synchronous>, transform_indices = @transform_1, window_bounds = array<i64: 256, 128>}, {pipeline_mode = #tpu.pipeline_mode<synchronous>, transform_indices = @transform_2, window_bounds = array<i64: 128, 128>}, {pipeline_mode = #tpu.pipeline_mode<synchronous>, transform_indices = @transform_3, window_bounds = array<i64: 8, 128>}, {transform_indices = @transform_4, window_bounds = array<i64: 16, 128>}]} {
    %c0 = arith.constant 0 : index
    %c0_0 = arith.constant 0 : index
    %0 = vector.load %arg1[%c0, %c0_0] : memref<16x256xbf16, #tpu.memory_space<vmem>>, vector<16x256xbf16>
    %c0_1 = arith.constant 0 : index
    %c0_2 = arith.constant 0 : index
    %1 = vector.load %arg4[%c0_1, %c0_2] : memref<8x128xf32, #tpu.memory_space<vmem>>, vector<8x128xf32>
    %2 = vector.extract_strided_slice %1 {offsets = [0, 0], sizes = [1, 128], strides = [1, 1]} : vector<8x128xf32> to vector<1x128xf32>
    %3 = vector.extract_strided_slice %1 {offsets = [1, 0], sizes = [1, 128], strides = [1, 1]} : vector<8x128xf32> to vector<1x128xf32>
    %4 = vector.extract_strided_slice %1 {offsets = [2, 0], sizes = [1, 128], strides = [1, 1]} : vector<8x128xf32> to vector<1x128xf32>
    %5 = vector.extract_strided_slice %1 {offsets = [3, 0], sizes = [1, 128], strides = [1, 1]} : vector<8x128xf32> to vector<1x128xf32>
    %6 = vector.extract_strided_slice %1 {offsets = [4, 0], sizes = [1, 128], strides = [1, 1]} : vector<8x128xf32> to vector<1x128xf32>
    %7 = vector.extract_strided_slice %1 {offsets = [5, 0], sizes = [1, 128], strides = [1, 1]} : vector<8x128xf32> to vector<1x128xf32>
    %c0_3 = arith.constant 0 : index
    %c0_4 = arith.constant 0 : index
    %8 = vector.load %arg2[%c0_3, %c0_4] : memref<256x128xbf16, #tpu.memory_space<vmem>>, vector<256x128xbf16>
    %cst = arith.constant dense<0.000000e+00> : vector<16x128xf32>
    %9 = tpu.matmul %0, %8, %cst {dimension_numbers = #tpu.dot_dimension_numbers<[1], [0], [0], [1], [0, 0, 1, 1], [], []>} : vector<16x256xbf16>, vector<256x128xbf16>, vector<16x128xf32> -> vector<16x128xf32>
    %10 = vector.broadcast %2 : vector<1x128xf32> to vector<16x128xf32>
    %11 = arith.addf %9, %10 : vector<16x128xf32>
    %cst_5 = arith.constant dense<0.000000e+00> : vector<16xf32>
    %12 = vector.multi_reduction <add>, %11, %cst_5 [1] : vector<16x128xf32> to vector<16xf32>
    %13 = vector.shape_cast %12 : vector<16xf32> to vector<16x1xf32>
    %cst_6 = arith.constant 1.280000e+02 : f32
    %14 = vector.broadcast %cst_6 : f32 to vector<16x1xf32>
    %15 = arith.divf %13, %14 : vector<16x1xf32>
    %16 = arith.mulf %11, %11 : vector<16x128xf32>
    %cst_7 = arith.constant dense<0.000000e+00> : vector<16xf32>
    %17 = vector.multi_reduction <add>, %16, %cst_7 [1] : vector<16x128xf32> to vector<16xf32>
    %18 = vector.shape_cast %17 : vector<16xf32> to vector<16x1xf32>
    %cst_8 = arith.constant 1.280000e+02 : f32
    %19 = vector.broadcast %cst_8 : f32 to vector<16x1xf32>
    %20 = arith.divf %18, %19 : vector<16x1xf32>
    %21 = arith.mulf %15, %15 : vector<16x1xf32>
    %22 = arith.subf %20, %21 : vector<16x1xf32>
    %cst_9 = arith.constant 0.000000e+00 : f32
    %23 = vector.broadcast %cst_9 : f32 to vector<16x1xf32>
    %24 = arith.maximumf %22, %23 : vector<16x1xf32>
    %cst_10 = arith.constant 9.99999974E-6 : f32
    %25 = vector.broadcast %cst_10 : f32 to vector<16x1xf32>
    %26 = arith.addf %24, %25 : vector<16x1xf32>
    %27 = math.rsqrt %26 : vector<16x1xf32>
    %28 = vector.broadcast %15 : vector<16x1xf32> to vector<16x128xf32>
    %29 = arith.subf %11, %28 : vector<16x128xf32>
    %30 = vector.broadcast %3 : vector<1x128xf32> to vector<16x128xf32>
    %31 = vector.broadcast %27 : vector<16x1xf32> to vector<16x128xf32>
    %32 = arith.mulf %30, %31 : vector<16x128xf32>
    %33 = arith.mulf %29, %32 : vector<16x128xf32>
    %34 = vector.broadcast %4 : vector<1x128xf32> to vector<16x128xf32>
    %35 = arith.addf %33, %34 : vector<16x128xf32>
    %cst_11 = arith.constant 0.000000e+00 : f32
    %36 = vector.broadcast %cst_11 : f32 to vector<16x128xf32>
    %37 = arith.maximumf %35, %36 : vector<16x128xf32>
    %38 = arith.truncf %37 : vector<16x128xf32> to vector<16x128xbf16>
    %c0_12 = arith.constant 0 : index
    %c0_13 = arith.constant 0 : index
    %39 = vector.load %arg3[%c0_12, %c0_13] : memref<128x128xbf16, #tpu.memory_space<vmem>>, vector<128x128xbf16>
    %cst_14 = arith.constant dense<0.000000e+00> : vector<16x128xf32>
    %40 = tpu.matmul %38, %39, %cst_14 {dimension_numbers = #tpu.dot_dimension_numbers<[1], [0], [0], [1], [0, 0, 1, 1], [], []>} : vector<16x128xbf16>, vector<128x128xbf16>, vector<16x128xf32> -> vector<16x128xf32>
    %41 = vector.broadcast %5 : vector<1x128xf32> to vector<16x128xf32>
    %42 = arith.addf %40, %41 : vector<16x128xf32>
    %cst_15 = arith.constant dense<0.000000e+00> : vector<16xf32>
    %43 = vector.multi_reduction <add>, %42, %cst_15 [1] : vector<16x128xf32> to vector<16xf32>
    %44 = vector.shape_cast %43 : vector<16xf32> to vector<16x1xf32>
    %cst_16 = arith.constant 1.280000e+02 : f32
    %45 = vector.broadcast %cst_16 : f32 to vector<16x1xf32>
    %46 = arith.divf %44, %45 : vector<16x1xf32>
    %47 = arith.mulf %42, %42 : vector<16x128xf32>
    %cst_17 = arith.constant dense<0.000000e+00> : vector<16xf32>
    %48 = vector.multi_reduction <add>, %47, %cst_17 [1] : vector<16x128xf32> to vector<16xf32>
    %49 = vector.shape_cast %48 : vector<16xf32> to vector<16x1xf32>
    %cst_18 = arith.constant 1.280000e+02 : f32
    %50 = vector.broadcast %cst_18 : f32 to vector<16x1xf32>
    %51 = arith.divf %49, %50 : vector<16x1xf32>
    %52 = arith.mulf %46, %46 : vector<16x1xf32>
    %53 = arith.subf %51, %52 : vector<16x1xf32>
    %cst_19 = arith.constant 0.000000e+00 : f32
    %54 = vector.broadcast %cst_19 : f32 to vector<16x1xf32>
    %55 = arith.maximumf %53, %54 : vector<16x1xf32>
    %cst_20 = arith.constant 9.99999974E-6 : f32
    %56 = vector.broadcast %cst_20 : f32 to vector<16x1xf32>
    %57 = arith.addf %55, %56 : vector<16x1xf32>
    %58 = math.rsqrt %57 : vector<16x1xf32>
    %59 = vector.broadcast %46 : vector<16x1xf32> to vector<16x128xf32>
    %60 = arith.subf %42, %59 : vector<16x128xf32>
    %61 = vector.broadcast %6 : vector<1x128xf32> to vector<16x128xf32>
    %62 = vector.broadcast %58 : vector<16x1xf32> to vector<16x128xf32>
    %63 = arith.mulf %61, %62 : vector<16x128xf32>
    %64 = arith.mulf %60, %63 : vector<16x128xf32>
    %65 = vector.broadcast %7 : vector<1x128xf32> to vector<16x128xf32>
    %66 = arith.addf %64, %65 : vector<16x128xf32>
    %cst_21 = arith.constant 0.000000e+00 : f32
    %67 = vector.broadcast %cst_21 : f32 to vector<16x128xf32>
    %68 = arith.maximumf %66, %67 : vector<16x128xf32>
    %c0_22 = arith.constant 0 : index
    %c0_23 = arith.constant 0 : index
    %69 = vector.load %arg5[%c0_22, %c0_23] : memref<16x128xf32, #tpu.memory_space<vmem>>, vector<16x128xf32>
    tpu.vector_store %arg5[%c0_22, %c0_23], %68 {strides = array<i32>} : memref<16x128xf32, #tpu.memory_space<vmem>>, vector<16x128xf32>,
    return
  }
  func.func @transform_0(%arg0: i32) -> (i32, i32) {
    %c0_i32 = arith.constant 0 : i32
    %c0_i32_0 = arith.constant 0 : i32
    return %arg0, %c0_i32 : i32, i32
  }
  func.func @transform_1(%arg0: i32) -> (i32, i32) {
    %c0_i32 = arith.constant 0 : i32
    %c0_i32_0 = arith.constant 0 : i32
    %c0_i32_1 = arith.constant 0 : i32
    return %c0_i32, %c0_i32_0 : i32, i32
  }
  func.func @transform_2(%arg0: i32) -> (i32, i32) {
    %c0_i32 = arith.constant 0 : i32
    %c0_i32_0 = arith.constant 0 : i32
    %c0_i32_1 = arith.constant 0 : i32
    return %c0_i32, %c0_i32_0 : i32, i32
  }
  func.func @transform_3(%arg0: i32) -> (i32, i32) {
    %c0_i32 = arith.constant 0 : i32
    %c0_i32_0 = arith.constant 0 : i32
    %c0_i32_1 = arith.constant 0 : i32
    return %c0_i32, %c0_i32_0 : i32, i32
  }
  func.func @transform_4(%arg0: i32) -> (i32, i32) {
    %c0_i32 = arith.constant 0 : i32
    %c0_i32_0 = arith.constant 0 : i32
    return %arg0, %c0_i32 : i32, i32
  }
}

module attributes {stable_mosaic.version = 11 : i64} {
  func.func @token_decoder_mlp_kernel(%arg0: i32, %arg1: memref<16x256xbf16, #tpu.memory_space<vmem>>, %arg2: memref<256x128xbf16, #tpu.memory_space<vmem>>, %arg3: memref<128x128xbf16, #tpu.memory_space<vmem>>, %arg4: memref<8x128xf32, #tpu.memory_space<vmem>>, %arg5: memref<16x128xf32, #tpu.memory_space<vmem>>) attributes {dimension_semantics = [#tpu.dimension_semantics<parallel>], iteration_bounds = array<i64: 1>, scalar_prefetch = 0 : i64, scratch_operands = 0 : i64, tpu.core_type = #tpu.core_type<tc>, window_params = [{transform_indices = @transform_0, window_bounds = array<i64: 16, 256>}, {pipeline_mode = #tpu.pipeline_mode<synchronous>, transform_indices = @transform_1, window_bounds = array<i64: 256, 128>}, {pipeline_mode = #tpu.pipeline_mode<synchronous>, transform_indices = @transform_2, window_bounds = array<i64: 128, 128>}, {pipeline_mode = #tpu.pipeline_mode<synchronous>, transform_indices = @transform_3, window_bounds = array<i64: 8, 128>}, {transform_indices = @transform_4, window_bounds = array<i64: 16, 128>}]} {
    %c0 = arith.constant 0 : index
    %c0_0 = arith.constant 0 : index
    %0 = vector.load %arg1[%c0, %c0_0] : memref<16x256xbf16, #tpu.memory_space<vmem>>, vector<16x256xbf16>
    %c0_1 = arith.constant 0 : index
    %c0_2 = arith.constant 0 : index
    %1 = vector.load %arg4[%c0_1, %c0_2] : memref<8x128xf32, #tpu.memory_space<vmem>>, vector<8x128xf32>
    %2 = vector.extract_strided_slice %1 {offsets = [0, 0], sizes = [1, 128], strides = [1, 1]} : vector<8x128xf32> to vector<1x128xf32>
    %3 = vector.extract_strided_slice %1 {offsets = [1, 0], sizes = [1, 128], strides = [1, 1]} : vector<8x128xf32> to vector<1x128xf32>
    %4 = vector.extract_strided_slice %1 {offsets = [2, 0], sizes = [1, 128], strides = [1, 1]} : vector<8x128xf32> to vector<1x128xf32>
    %5 = vector.extract_strided_slice %1 {offsets = [3, 0], sizes = [1, 128], strides = [1, 1]} : vector<8x128xf32> to vector<1x128xf32>
    %6 = vector.extract_strided_slice %1 {offsets = [4, 0], sizes = [1, 128], strides = [1, 1]} : vector<8x128xf32> to vector<1x128xf32>
    %7 = vector.extract_strided_slice %1 {offsets = [5, 0], sizes = [1, 128], strides = [1, 1]} : vector<8x128xf32> to vector<1x128xf32>
    %c0_3 = arith.constant 0 : index
    %c0_4 = arith.constant 0 : index
    %8 = vector.load %arg2[%c0_3, %c0_4] : memref<256x128xbf16, #tpu.memory_space<vmem>>, vector<256x128xbf16>
    %cst = arith.constant dense<0.000000e+00> : vector<16x128xf32>
    %9 = tpu.matmul %0, %8, %cst {dimension_numbers = #tpu.dot_dimension_numbers<[1], [0], [0], [1], [0, 0, 1, 1], [], []>} : vector<16x256xbf16>, vector<256x128xbf16>, vector<16x128xf32> -> vector<16x128xf32>
    %10 = vector.broadcast %2 : vector<1x128xf32> to vector<16x128xf32>
    %11 = arith.addf %9, %10 : vector<16x128xf32>
    %cst_5 = arith.constant dense<0.000000e+00> : vector<16xf32>
    %12 = vector.multi_reduction <add>, %11, %cst_5 [1] : vector<16x128xf32> to vector<16xf32>
    %13 = vector.shape_cast %12 : vector<16xf32> to vector<16x1xf32>
    %cst_6 = arith.constant 1.280000e+02 : f32
    %14 = vector.broadcast %cst_6 : f32 to vector<16x1xf32>
    %15 = arith.divf %13, %14 : vector<16x1xf32>
    %16 = arith.mulf %11, %11 : vector<16x128xf32>
    %cst_7 = arith.constant dense<0.000000e+00> : vector<16xf32>
    %17 = vector.multi_reduction <add>, %16, %cst_7 [1] : vector<16x128xf32> to vector<16xf32>
    %18 = vector.shape_cast %17 : vector<16xf32> to vector<16x1xf32>
    %cst_8 = arith.constant 1.280000e+02 : f32
    %19 = vector.broadcast %cst_8 : f32 to vector<16x1xf32>
    %20 = arith.divf %18, %19 : vector<16x1xf32>
    %21 = arith.mulf %15, %15 : vector<16x1xf32>
    %22 = arith.subf %20, %21 : vector<16x1xf32>
    %cst_9 = arith.constant 0.000000e+00 : f32
    %23 = vector.broadcast %cst_9 : f32 to vector<16x1xf32>
    %24 = arith.maximumf %22, %23 : vector<16x1xf32>
    %cst_10 = arith.constant 9.99999974E-6 : f32
    %25 = vector.broadcast %cst_10 : f32 to vector<16x1xf32>
    %26 = arith.addf %24, %25 : vector<16x1xf32>
    %27 = math.rsqrt %26 : vector<16x1xf32>
    %28 = vector.broadcast %15 : vector<16x1xf32> to vector<16x128xf32>
    %29 = arith.subf %11, %28 : vector<16x128xf32>
    %30 = vector.broadcast %3 : vector<1x128xf32> to vector<16x128xf32>
    %31 = vector.broadcast %27 : vector<16x1xf32> to vector<16x128xf32>
    %32 = arith.mulf %30, %31 : vector<16x128xf32>
    %33 = arith.mulf %29, %32 : vector<16x128xf32>
    %34 = vector.broadcast %4 : vector<1x128xf32> to vector<16x128xf32>
    %35 = arith.addf %33, %34 : vector<16x128xf32>
    %cst_11 = arith.constant 0.000000e+00 : f32
    %36 = vector.broadcast %cst_11 : f32 to vector<16x128xf32>
    %37 = arith.maximumf %35, %36 : vector<16x128xf32>
    %38 = arith.truncf %37 : vector<16x128xf32> to vector<16x128xbf16>
    %c0_12 = arith.constant 0 : index
    %c0_13 = arith.constant 0 : index
    %39 = vector.load %arg3[%c0_12, %c0_13] : memref<128x128xbf16, #tpu.memory_space<vmem>>, vector<128x128xbf16>
    %cst_14 = arith.constant dense<0.000000e+00> : vector<16x128xf32>
    %40 = tpu.matmul %38, %39, %cst_14 {dimension_numbers = #tpu.dot_dimension_numbers<[1], [0], [0], [1], [0, 0, 1, 1], [], []>} : vector<16x128xbf16>, vector<128x128xbf16>, vector<16x128xf32> -> vector<16x128xf32>
    %41 = vector.broadcast %5 : vector<1x128xf32> to vector<16x128xf32>
    %42 = arith.addf %40, %41 : vector<16x128xf32>
    %cst_15 = arith.constant dense<0.000000e+00> : vector<16xf32>
    %43 = vector.multi_reduction <add>, %42, %cst_15 [1] : vector<16x128xf32> to vector<16xf32>
    %44 = vector.shape_cast %43 : vector<16xf32> to vector<16x1xf32>
    %cst_16 = arith.constant 1.280000e+02 : f32
    %45 = vector.broadcast %cst_16 : f32 to vector<16x1xf32>
    %46 = arith.divf %44, %45 : vector<16x1xf32>
    %47 = arith.mulf %42, %42 : vector<16x128xf32>
    %cst_17 = arith.constant dense<0.000000e+00> : vector<16xf32>
    %48 = vector.multi_reduction <add>, %47, %cst_17 [1] : vector<16x128xf32> to vector<16xf32>
    %49 = vector.shape_cast %48 : vector<16xf32> to vector<16x1xf32>
    %cst_18 = arith.constant 1.280000e+02 : f32
    %50 = vector.broadcast %cst_18 : f32 to vector<16x1xf32>
    %51 = arith.divf %49, %50 : vector<16x1xf32>
    %52 = arith.mulf %46, %46 : vector<16x1xf32>
    %53 = arith.subf %51, %52 : vector<16x1xf32>
    %cst_19 = arith.constant 0.000000e+00 : f32
    %54 = vector.broadcast %cst_19 : f32 to vector<16x1xf32>
    %55 = arith.maximumf %53, %54 : vector<16x1xf32>
    %cst_20 = arith.constant 9.99999974E-6 : f32
    %56 = vector.broadcast %cst_20 : f32 to vector<16x1xf32>
    %57 = arith.addf %55, %56 : vector<16x1xf32>
    %58 = math.rsqrt %57 : vector<16x1xf32>
    %59 = vector.broadcast %46 : vector<16x1xf32> to vector<16x128xf32>
    %60 = arith.subf %42, %59 : vector<16x128xf32>
    %61 = vector.broadcast %6 : vector<1x128xf32> to vector<16x128xf32>
    %62 = vector.broadcast %58 : vector<16x1xf32> to vector<16x128xf32>
    %63 = arith.mulf %61, %62 : vector<16x128xf32>
    %64 = arith.mulf %60, %63 : vector<16x128xf32>
    %65 = vector.broadcast %7 : vector<1x128xf32> to vector<16x128xf32>
    %66 = arith.addf %64, %65 : vector<16x128xf32>
    %cst_21 = arith.constant 0.000000e+00 : f32
    %67 = vector.broadcast %cst_21 : f32 to vector<16x128xf32>
    %68 = arith.maximumf %66, %67 : vector<16x128xf32>
    %c0_22 = arith.constant 0 : index
    %c0_23 = arith.constant 0 : index
    %69 = vector.load %arg5[%c0_22, %c0_23] : memref<16x128xf32, #tpu.memory_space<vmem>>, vector<16x128xf32>
    tpu.vector_store %arg5[%c0_22, %c0_23], %68 {strides = array<i32>} : memref<16x128xf32, #tpu.memory_space<vmem>>, vector<16x128xf32>,
    return
  }
  func.func @transform_0(%arg0: i32) -> (i32, i32) {
    %c0_i32 = arith.constant 0 : i32
    %c0_i32_0 = arith.constant 0 : i32
    return %arg0, %c0_i32 : i32, i32
  }
  func.func @transform_1(%arg0: i32) -> (i32, i32) {
    %c0_i32 = arith.constant 0 : i32
    %c0_i32_0 = arith.constant 0 : i32
    %c0_i32_1 = arith.constant 0 : i32
    return %c0_i32, %c0_i32_0 : i32, i32
  }
  func.func @transform_2(%arg0: i32) -> (i32, i32) {
    %c0_i32 = arith.constant 0 : i32
    %c0_i32_0 = arith.constant 0 : i32
    %c0_i32_1 = arith.constant 0 : i32
    return %c0_i32, %c0_i32_0 : i32, i32
  }
  func.func @transform_3(%arg0: i32) -> (i32, i32) {
    %c0_i32 = arith.constant 0 : i32
    %c0_i32_0 = arith.constant 0 : i32
    %c0_i32_1 = arith.constant 0 : i32
    return %c0_i32, %c0_i32_0 : i32, i32
  }
  func.func @transform_4(%arg0: i32) -> (i32, i32) {
    %c0_i32 = arith.constant 0 : i32
    %c0_i32_0 = arith.constant 0 : i32
    return %arg0, %c0_i32 : i32, i32
  }
}

</mosaic_0001>

<bundles_post_ra>
// kernel: tpu_custom_call.1
= control target key start
LH: loop header
LB: loop body
LE: loop exit
PB: predicated region body
PF: predicated region fallthrough
CT: control target
= control target key end

     0   :  { %9 = vsyncpa [#allocation3], 0  ;;  %s867_s0 = inlined_call_operand.hbm [shape: bf16[2,256], index: 0, kind: input, shape index: {}]   ;;  %s868_s1 = inlined_call_operand.hbm [shape: bf16[256,128], index: 1, kind: input, shape index: {}]   ;;  %s869_s2 = inlined_call_operand.hbm [shape: bf16[128,128], index: 2, kind: input, shape index: {}]   ;;  %s870_s3 = inlined_call_operand.vmem [shape: f32[8,128], index: 3, kind: input, shape index: {}]   ;;  %s871_s4 = inlined_call_operand.hbm [shape: f32[2,128], index: 4, kind: output, shape index: {}]  }
   0x1   :  { %10 = vsyncpa [#allocation6], 0 }
   0x2   :  { %11 = vsyncpa [#allocation4], 0 }
   0x3   :  { %16 = vsyncadd [#allocation3], 224  ;;  %s745_s15 = smov [#allocation5]   ;;  %s651_s19 = scalar_lea.hbm %s868_s1, 2048 }
   0x4   :  { %s29_s16 = sshll.u32 %s745_s15, 4  ;;  %p652_p0 = scmp.ne.s32.totalorder %s868_s1, %s651_s19  ;;  %s30_s16 = int_to_ptr.vmem [resolvable:$true] %s29_s16 }
   0x5   :  { %p655_p1 = scmp.lt.u32.totalorder %s651_s19, %s868_s1 }
   0x7   :  { %p657_p2 = pnand %p655_p1, %p652_p0 }
   0x9   :  { %660 = shalt.err (!%p657_p2)
}
   0xa   :  { %s661_s24 = scalar_lea.vmem %s30_s16, 2048  ;;  %p666_p4 = scmp.lt.s32.totalorder %s30_s16, %s30_s16 }
   0xb   :  { %p662_p3 = scmp.ne.s32.totalorder %s30_s16, %s661_s24  ;;  %p667_p5 = scmp.lt.s32.totalorder %s661_s24, %s661_s24 }
   0xd   :  { %p668_p6 = por %p667_p5, %p666_p4 }
   0xf   :  { %p669_p7 = pnand %p668_p6, %p662_p3 }
  0x11   :  { %672 = shalt.err (!%p669_p7)
}
  0x12   :  { %s746_s25 = smov 64   ;;  %s747_s26 = smov 4  }
  0x13   :  { %35 = dma.hbm_to_vmem [thread:$0]  %s868_s1, 2048, %s30_s16, [#allocation6], %s746_s25, %s746_s25, %s747_s26  }
  0x14   :  { %s748_s29 = smov [#allocation2]   ;;  %s673_s7 = scalar_lea.hbm %s867_s0, 32 }
  0x15   :  { %s17_s30 = sshll.u32 %s748_s29, 4  ;;  %p674_p8 = scmp.ne.s32.totalorder %s867_s0, %s673_s7  ;;  %s18_s30 = int_to_ptr.vmem [resolvable:$true] %s17_s30 }
  0x16   :  { %p677_p9 = scmp.lt.u32.totalorder %s673_s7, %s867_s0 }
  0x18   :  { %p679_p10 = pnand %p677_p9, %p674_p8 }
  0x1a   :  { %682 = shalt.err (!%p679_p10)
}
  0x1b   :  { %s683_s12 = scalar_lea.vmem %s18_s30, 32  ;;  %s687_s1 = scalar_lea.vmem %s18_s30, 256 }
  0x1c   :  { %p684_p11 = scmp.ne.s32.totalorder %s18_s30, %s683_s12  ;;  %p688_p12 = scmp.lt.s32.totalorder %s18_s30, %s18_s30 }
  0x1d   :  { %p689_p13 = scmp.lt.s32.totalorder %s687_s1, %s683_s12 }
  0x1f   :  { %p690_p0 = por %p689_p13, %p688_p12 }
  0x21   :  { %p691_p1 = pnand %p690_p0, %p684_p11 }
  0x23   :  { %694 = shalt.err (!%p691_p1)
}
  0x24   :  { %s749_s13 = smov 32   ;;  %s750_s14 = smov 2  }
  0x25   :  { %23 = dma.hbm_to_vmem [thread:$0]  %s867_s0, 32, %s18_s30, [#allocation3], %s749_s13, %s749_s13, %s750_s14  }
  0x26   :  { %s751_s17 = smov [#allocation7]   ;;  %s695_s21 = scalar_lea.hbm %s869_s2, 1024 }
  0x27   :  { %s41_s18 = sshll.u32 %s751_s17, 4  ;;  %p696_p2 = scmp.ne.s32.totalorder %s869_s2, %s695_s21  ;;  %s42_s18 = int_to_ptr.vmem [resolvable:$true] %s41_s18 }
  0x28   :  { %p699_p3 = scmp.lt.u32.totalorder %s695_s21, %s869_s2 }
  0x2a   :  { %p701_p4 = pnand %p699_p3, %p696_p2 }
  0x2c   :  { %704 = shalt.err (!%p701_p4)
}
  0x2d   :  { %s705_s28 = scalar_lea.vmem %s42_s18, 1024  ;;  %p710_p6 = scmp.lt.s32.totalorder %s42_s18, %s42_s18 }
  0x2e   :  { %p706_p5 = scmp.ne.s32.totalorder %s42_s18, %s705_s28  ;;  %p711_p7 = scmp.lt.s32.totalorder %s705_s28, %s705_s28 }
  0x30   :  { %p712_p8 = por %p711_p7, %p710_p6 }
  0x32   :  { %p713_p9 = pnand %p712_p8, %p706_p5 }
  0x34   :  { %716 = shalt.err (!%p713_p9)
}
  0x35   :  { %47 = dma.hbm_to_vmem [thread:$0]  %s869_s2, 1024, %s42_s18, [#allocation6], %s746_s25, %s746_s25, %s747_s26  }
  0x36   :  { %739 = dma.done.wait [#allocation3], 256  }
  0x37   :  { %740 = vsyncadd [#allocation3], 4294967040 }
  0x38   :  { %741 = dma.done.wait [#allocation6], 3072  }
  0x39   :  { %742 = vsyncadd [#allocation6], 4294964224  ;;  %v619_v0 = vld [vmem:[#allocation5 + $0x40] sm:$0xff]   ;;  %v621_v2 = vld [vmem:[#allocation5 + $0x48] sm:$0xff]   ;;  %v101_v6 = vlaneseq  ;;  %v752_v7 = vmov 1966171168  }
  0x3a   :  { %v620_v1 = vld [vmem:[#allocation5] sm:$0xff]   ;;  %557 = vmatprep.subr.bf16.mxu0 %v619_v0  ;;  %v622_v3 = vld [vmem:[#allocation5 + $0x8] sm:$0xff]   ;;  %v623_v4 = vld [vmem:[#allocation5 + $0x50] sm:$0xff]   ;;  %v118_v8 = vunpack.c.l.s4 %v752_v7  ;;  %v753_v62 = vmov 0.0   ;;  %vm754_vm0 = vmmov 0  }
  0x3b   :  { %558 = vmatpush3.bf16.msra.mxu0 %v620_v1  ;;  %v624_v5 = vld [vmem:[#allocation5 + $0x10] sm:$0xff]   ;;  %v625_v9 = vld [vmem:[#allocation5 + $0x58] sm:$0xff]   ;;  %v826_v11 = vshrl.u32 %v101_v6, 7  ;;  %v627_v13 = vld [vmem:[#allocation5 + $0x60] sm:$0xff]   ;;  %588 = vmatprep.subr.bf16.mxu1 %v753_v62 }
  0x3c   :  { %559 = vmatprep.subr.bf16.mxu0 %v621_v2  ;;  %v626_v10 = vld [vmem:[#allocation5 + $0x18] sm:$0xff]   ;;  %v119_v12 = vunpack.c.0.s8 %v118_v8  ;;  %v628_v14 = vld [vmem:[#allocation5 + $0x20] sm:$0xff]   ;;  %v629_v15 = vld [vmem:[#allocation5 + $0x68] sm:$0xff]   ;;  %604 = vmatprep.mubr.msk.bf16.mxu1 %vm754_vm0, %v753_v62 }
  0x3d   :  { %v60_v17 = vld [vmem:[#allocation2] sm:$0x3]  ;;  %v61_v18 = vld [vmem:[#allocation2 + $0x2] sm:$0x3]  ;;  %v62_v19 = vld [vmem:[#allocation2 + $0x4] sm:$0x3] }
  0x3e   :  { %v122_v16 = vsub.s32 %v119_v12, %v826_v11  ;;  %v630_v20 = vld [vmem:[#allocation5 + $0x28] sm:$0xff]   ;;  %v63_v21 = vld [vmem:[#allocation2 + $0x6] sm:$0x3]  ;;  %v64_v22 = vld [vmem:[#allocation2 + $0x8] sm:$0x3]  ;;  %v113_v24 = vcombine.low %v60_v17, %v61_v18  ;;  %v103_v48 = vsub.s32 0, %v826_v11 }
  0x3f   :  { %560 = vmatpush3.bf16.msra.mxu0 %v622_v3  ;;  %v65_v23 = vld [vmem:[#allocation2 + $0xa] sm:$0x3]  ;;  %v631_v25 = vld [vmem:[#allocation5 + $0x70] sm:$0xff]   ;;  %v66_v26 = vld [vmem:[#allocation2 + $0xc] sm:$0x3]  ;;  %v114_v28 = vcombine.low %v62_v19, %v63_v21 }
  0x40   :  { %561 = vmatprep.subr.bf16.mxu0 %v623_v4  ;;  %v67_v27 = vld [vmem:[#allocation2 + $0xe] sm:$0x3]  ;;  %v115_v29 = vcombine.low %v64_v22, %v65_v23  ;;  %v123_v31 = vrot.slane %v113_v24, %v122_v16  ;;  %v632_v34 = vld [vmem:[#allocation5 + $0x30] sm:$0xff]   ;;  %v833_v49 = vld [vmem:[%s870_s3] sm:$0xff]  ;;  %v347_v23 = vsub.s32 1, %v826_v11 }
  0x41   :  { %v116_v30 = vcombine.low %v66_v26, %v67_v27  ;;  %v130_v32 = vrot.slane %v114_v28, %v122_v16  ;;  %v633_v40 = vld [vmem:[#allocation5 + $0x78] sm:$0xff]   ;;  %v104_v51 = vrot.slane %v833_v49, %v103_v48  ;;  %v635_v61 = vld [vmem:[#allocation7] sm:$0xff]   ;;  %v636_v63 = vld [vmem:[#allocation7 + $0x8] sm:$0xff]  }
  0x42   :  { %v137_v33 = vrot.slane %v115_v29, %v122_v16  ;;  %v634_v45 = vld [vmem:[#allocation5 + $0x38] sm:$0xff]   ;;  %589 = vmatpush3.bf16.msra.mxu1 %v635_v61  ;;  %v637_v0 = vld [vmem:[#allocation7 + $0x10] sm:$0xff]   ;;  %v639_v2 = vld [vmem:[#allocation7 + $0x20] sm:$0xff]   ;;  %v348_v24 = vrot.slane %v833_v49, %v347_v23 }
  0x43   :  { %562 = vmatpush3.bf16.msra.mxu0 %v624_v5  ;;  %v144_v35 = vrot.slane %v116_v30, %v122_v16  ;;  %v146_v36 = vcombine.high %v123_v31, %v130_v32  ;;  %v145_v37 = vcombine.low %v123_v31, %v130_v32  ;;  %590 = vmatprep.subr.bf16.mxu1 %v753_v62  ;;  %v638_v1 = vld [vmem:[#allocation7 + $0x18] sm:$0xff]   ;;  %v640_v3 = vld [vmem:[#allocation7 + $0x28] sm:$0xff]   ;;  %v641_v4 = vld [vmem:[#allocation7 + $0x30] sm:$0xff]  }
  0x44   :  { %563 = vmatprep.subr.bf16.mxu0 %v625_v9  ;;  %v642_v5 = vld [vmem:[#allocation7 + $0x38] sm:$0xff]  }
  0x45   :  { %v148_v38 = vcombine.high %v137_v33, %v144_v35  ;;  %v147_v39 = vcombine.low %v137_v33, %v144_v35  ;;  %v162_v41 = vrot.slane %v146_v36, %v122_v16  ;;  %v155_v43 = vrot.slane %v145_v37, %v122_v16 }
  0x46   :  { %591 = vmatpush3.bf16.msra.mxu1 %v636_v63 }
  0x47   :  { %564 = vmatpush3.bf16.msra.mxu0 %v626_v10  ;;  %v176_v42 = vrot.slane %v148_v38, %v122_v16  ;;  %v169_v44 = vrot.slane %v147_v39, %v122_v16  ;;  %592 = vmatprep.subr.bf16.mxu1 %v753_v62 }
  0x48   :  { %565 = vmatprep.subr.bf16.mxu0 %v627_v13 }
  0x49   :  { %v178_v46 = vcombine.low %v162_v41, %v176_v42  ;;  %v177_v47 = vcombine.low %v155_v43, %v169_v44 }
  0x4a   :  { %593 = vmatpush3.bf16.msra.mxu1 %v637_v0 }
  0x4b   :  { %566 = vmatpush3.bf16.msra.mxu0 %v628_v14  ;;  %309 = vmatprep.mubr.bf16.mxu0 %v178_v46 }
  0x4c   :  { %567 = vmatprep.subr.bf16.mxu0 %v629_v15  ;;  %594 = vmatprep.subr.bf16.mxu1 %v753_v62 }
  0x4e   :  { %595 = vmatpush3.bf16.msra.mxu1 %v638_v1 }
  0x4f   :  { %568 = vmatpush3.bf16.msra.mxu0 %v630_v20  ;;  %596 = vmatprep.subr.bf16.mxu1 %v753_v62 }
  0x50   :  { %569 = vmatprep.subr.bf16.mxu0 %v631_v25  ;;  %v355_v25 = vsub.s32 2, %v826_v11 }
  0x52   :  { %597 = vmatpush3.bf16.msra.mxu1 %v639_v2  ;;  %v356_v30 = vrot.slane %v833_v49, %v355_v25 }
  0x53   :  { %570 = vmatpush3.bf16.msra.mxu0 %v632_v34  ;;  %598 = vmatprep.subr.bf16.mxu1 %v753_v62 }
  0x54   :  { %571 = vmatprep.subr.bf16.mxu0 %v633_v40  ;;  %v380_v40 = vsub.s32 3, %v826_v11 }
  0x56   :  { %599 = vmatpush3.bf16.msra.mxu1 %v640_v3  ;;  %v381_v41 = vrot.slane %v833_v49, %v380_v40  ;;  %v499_v3 = vsub.s32 4, %v826_v11 }
  0x57   :  { %572 = vmatpush3.bf16.msra.mxu0 %v634_v45  ;;  %600 = vmatprep.subr.bf16.mxu1 %v753_v62 }
  0x5a   :  { %310 = vmatmul.mubr.bf16.vlgmr.msra.gmra.mrb[0].mxu0 %v177_v47  ;;  %601 = vmatpush3.bf16.msra.mxu1 %v641_v4  ;;  %v500_v4 = vrot.slane %v833_v49, %v499_v3 }
  0x5b   :  { %602 = vmatprep.subr.bf16.mxu1 %v753_v62 }
  0x5e   :  { %603 = vmatpush3.bf16.msra.mxu1 %v642_v5  ;;  %v507_v5 = vsub.s32 5, %v826_v11 }
 0x12d   :  { %v573_v50 = vpop.f32.mrb[0].mxu0 }
 0x12e   :  { %v574_v52 = vpop.f32.mrb[1].mxu0 }
 0x12f   :  { %v575_v53 = vadd.f32 %v574_v52, %v573_v50  ;;  %v576_v54 = vpop.f32.mrb[2].mxu0 }
 0x130   :  { %v577_v55 = vpop.f32.mrb[3].mxu0 }
 0x131   :  { %v312_v56 = vadd.f32 %v575_v53, %v104_v51  ;;  %v578_v57 = vadd.f32 %v577_v55, %v576_v54 }
 0x133   :  { %v836_v58 = vadd.f32 %v578_v57, %v104_v51  ;;  %318 = vadd.xlane.f32.xlu0 %v312_v56  ;;  %v325_v59 = vmul.f32 %v312_v56, %v312_v56 }
 0x135   :  { %327 = vadd.xlane.f32.xlu1 %v325_v59  ;;  %v326_v60 = vmul.f32 %v836_v58, %v836_v58 }
 0x137   :  { %320 = vadd.xlane.f32.xlu0 %v836_v58 }
 0x139   :  { %329 = vadd.xlane.f32.xlu1 %v326_v60 }
 0x1c0   :  { %v319_v6 = vpop.xlane.xlu0 %318 }
 0x1c1   :  { %v323_v7 = vmul.f32 0.0078125, %v319_v6 }
 0x1c2   :  { %v328_v8 = vpop.xlane.xlu1 %327 }
 0x1c3   :  { %v333_v9 = vmul.f32 %v323_v7, %v323_v7  ;;  %v331_v10 = vmul.f32 0.0078125, %v328_v8  ;;  %v343_v27 = vsub.f32 %v312_v56, %v323_v7  ;;  %v508_v8 = vrot.slane %v833_v49, %v507_v5 }
 0x1c4   :  { %v321_v12 = vpop.xlane.xlu0 %320 }
 0x1c5   :  { %v335_v13 = vsub.f32 %v331_v10, %v333_v9  ;;  %v324_v14 = vmul.f32 0.0078125, %v321_v12 }
 0x1c6   :  { %v330_v15 = vpop.xlane.xlu1 %329 }
 0x1c7   :  { %v337_v16 = vmax.f32 %v335_v13, 0.0  ;;  %v334_v17 = vmul.f32 %v324_v14, %v324_v14  ;;  %v332_v18 = vmul.f32 0.0078125, %v330_v15  ;;  %v344_v32 = vsub.f32 %v836_v58, %v324_v14 }
 0x1c9   :  { %v339_v19 = vadd.f32 1e-05, %v337_v16  ;;  %v336_v20 = vsub.f32 %v332_v18, %v334_v17 }
 0x1cb   :  { %643 = vrsqrt.f32 %v339_v19  ;;  %v338_v21 = vmax.f32 %v336_v20, 0.0 }
 0x1cd   :  { %v340_v22 = vadd.f32 1e-05, %v338_v21 }
 0x1cf   :  { %645 = vrsqrt.f32 %v340_v22 }
 0x1d5   :  { %v644_v26 = vpop.eup %643 }
 0x1d6   :  { %v349_v28 = vmul.f32 %v644_v26, %v348_v24 }
 0x1d8   :  { %v351_v29 = vmul.f32 %v349_v28, %v343_v27 }
 0x1d9   :  { %v646_v31 = vpop.eup %645 }
 0x1da   :  { %v350_v33 = vmul.f32 %v646_v31, %v348_v24  ;;  %v357_v35 = vadd.f32 %v356_v30, %v351_v29 }
 0x1dc   :  { %v352_v34 = vmul.f32 %v350_v33, %v344_v32  ;;  %v359_v37 = vmax.f32 %v357_v35, 0.0 }
 0x1de   :  { %v358_v36 = vadd.f32 %v356_v30, %v352_v34 }
 0x1e0   :  { %v360_v38 = vmax.f32 %v358_v36, 0.0 }
 0x1e2   :  { %v361_v39 = vpack.c.bf16 %v360_v38, %v359_v37 }
 0x1e4   :  { %605 = vmatmul.mubr.bf16.vlgmr.msra.gmra.mrb[0].mxu1 %v361_v39 }
 0x2b7   :  { %v464_v42 = vpop.f32.mrb[0].mxu1 }
 0x2b8   :  { %v465_v43 = vadd.f32 %v464_v42, %v381_v41  ;;  %v606_v44 = vpop.f32.mrb[1].mxu1 }
 0x2b9   :  { %v467_v45 = vpop.f32.mrb[2].mxu1 }
 0x2ba   :  { %v468_v46 = vadd.f32 %v467_v45, %v381_v41  ;;  %471 = vadd.xlane.f32.xlu0 %v465_v43  ;;  %v607_v47 = vpop.f32.mrb[3].mxu1  ;;  %v477_v48 = vmul.f32 %v465_v43, %v465_v43 }
 0x2bc   :  { %473 = vadd.xlane.f32.xlu1 %v468_v46  ;;  %v478_v50 = vmul.f32 %v468_v46, %v468_v46 }
 0x2be   :  { %479 = vadd.xlane.f32.xlu0 %v477_v48 }
 0x2c0   :  { %481 = vadd.xlane.f32.xlu1 %v478_v50 }
 0x347   :  { %v472_v51 = vpop.xlane.xlu0 %471 }
 0x348   :  { %v475_v52 = vmul.f32 0.0078125, %v472_v51 }
 0x349   :  { %v474_v53 = vpop.xlane.xlu1 %473 }
 0x34a   :  { %v476_v54 = vmul.f32 0.0078125, %v474_v53  ;;  %v485_v56 = vmul.f32 %v475_v52, %v475_v52  ;;  %v495_v7 = vsub.f32 %v465_v43, %v475_v52 }
 0x34b   :  { %v480_v55 = vpop.xlane.xlu0 %479 }
 0x34c   :  { %v483_v57 = vmul.f32 0.0078125, %v480_v55  ;;  %v486_v59 = vmul.f32 %v476_v54, %v476_v54  ;;  %v496_v12 = vsub.f32 %v468_v46, %v476_v54 }
 0x34d   :  { %v482_v58 = vpop.xlane.xlu1 %481 }
 0x34e   :  { %v487_v60 = vsub.f32 %v483_v57, %v485_v56  ;;  %v484_v61 = vmul.f32 0.0078125, %v482_v58 }
 0x350   :  { %v489_v62 = vmax.f32 %v487_v60, 0.0  ;;  %v488_v63 = vsub.f32 %v484_v61, %v486_v59 }
 0x352   :  { %v491_v0 = vadd.f32 1e-05, %v489_v62  ;;  %v490_v1 = vmax.f32 %v488_v63, 0.0 }
 0x354   :  { %647 = vrsqrt.f32 %v491_v0  ;;  %v492_v2 = vadd.f32 1e-05, %v490_v1 }
 0x356   :  { %649 = vrsqrt.f32 %v492_v2 }
 0x35e   :  { %v648_v6 = vpop.eup %647 }
 0x35f   :  { %v501_v9 = vmul.f32 %v648_v6, %v500_v4 }
 0x360   :  { %v650_v10 = vpop.eup %649 }
 0x361   :  { %v503_v13 = vmul.f32 %v501_v9, %v495_v7  ;;  %v502_v14 = vmul.f32 %v650_v10, %v500_v4 }
 0x363   :  { %v509_v15 = vadd.f32 %v508_v8, %v503_v13  ;;  %v504_v16 = vmul.f32 %v502_v14, %v496_v12 }
 0x365   :  { %v511_v17 = vmax.f32 %v509_v15, 0.0  ;;  %v510_v18 = vadd.f32 %v508_v8, %v504_v16 }
 0x367   :  { %513 = vst [vmem:[#allocation8] sm:$0xff] %v511_v17  ;;  %v512_v19 = vmax.f32 %v510_v18, 0.0 }
 0x369   :  { %514 = vst [vmem:[#allocation8 + $0x8] sm:$0xff] %v512_v19 }
 0x36a   :  { %519 = vsyncadd [#allocation4], 224  ;;  %s755_s3 = smov [#allocation8]  }
 0x36b   :  { %s520_s26 = sshll.u32 %s755_s3, 4  ;;  %s521_s26 = int_to_ptr.vmem [resolvable:$true] %s520_s26 }
 0x36c   :  { %s717_s30 = scalar_lea.vmem %s521_s26, 32  ;;  %s721_s5 = scalar_lea.vmem %s521_s26, 256 }
 0x36d   :  { %p718_p10 = scmp.ne.s32.totalorder %s521_s26, %s717_s30  ;;  %p722_p11 = scmp.lt.s32.totalorder %s521_s26, %s521_s26 }
 0x36e   :  { %p723_p12 = scmp.lt.s32.totalorder %s721_s5, %s717_s30 }
 0x370   :  { %p724_p13 = por %p723_p12, %p722_p11 }
 0x372   :  { %p725_p0 = pnand %p724_p13, %p718_p10 }
 0x374   :  { %728 = shalt.err (!%p725_p0)
}
 0x375   :  { %s729_s8 = scalar_lea.hbm %s871_s4, 32 }
 0x376   :  { %p730_p1 = scmp.ne.s32.totalorder %s871_s4, %s729_s8  ;;  %p733_p2 = scmp.lt.u32.totalorder %s729_s8, %s871_s4 }
 0x378   :  { %p735_p3 = pnand %p733_p2, %p730_p1 }
 0x37a   :  { %738 = shalt.err (!%p735_p3)
}
 0x37b   :  { %526 = dma.vmem_to_hbm [thread:$0]  %s521_s26, 32, %s871_s4, [#allocation4], %s749_s13, %s749_s13, %s750_s14  }
 0x37c   :  { %743 = dma.done.wait [#allocation4], 256  }
 0x37d   :  { %744 = vsyncadd [#allocation4], 4294967040 }
 0x37e   :  { %530 = vsyncpa [#allocation3], 1 }
 0x37f   :  { %531 = vsyncpa [#allocation6], 1 }
 0x380   :  { %532 = vsyncpa [#allocation4], 1 }

// kernel: tpu_custom_call.1
= control target key start
LH: loop header
LB: loop body
LE: loop exit
PB: predicated region body
PF: predicated region fallthrough
CT: control target
= control target key end

     0   :  { %9 = vsyncpa [#allocation3], 0  ;;  %s867_s0 = inlined_call_operand.hbm [shape: bf16[2,256], index: 0, kind: input, shape index: {}]   ;;  %s868_s1 = inlined_call_operand.hbm [shape: bf16[256,128], index: 1, kind: input, shape index: {}]   ;;  %s869_s2 = inlined_call_operand.hbm [shape: bf16[128,128], index: 2, kind: input, shape index: {}]   ;;  %s870_s3 = inlined_call_operand.vmem [shape: f32[8,128], index: 3, kind: input, shape index: {}]   ;;  %s871_s4 = inlined_call_operand.hbm [shape: f32[2,128], index: 4, kind: output, shape index: {}]  }
   0x1   :  { %10 = vsyncpa [#allocation6], 0 }
   0x2   :  { %11 = vsyncpa [#allocation4], 0 }
   0x3   :  { %16 = vsyncadd [#allocation3], 224  ;;  %s745_s15 = smov [#allocation5]   ;;  %s651_s19 = scalar_lea.hbm %s868_s1, 2048 }
   0x4   :  { %s29_s16 = sshll.u32 %s745_s15, 4  ;;  %p652_p0 = scmp.ne.s32.totalorder %s868_s1, %s651_s19  ;;  %s30_s16 = int_to_ptr.vmem [resolvable:$true] %s29_s16 }
   0x5   :  { %p655_p1 = scmp.lt.u32.totalorder %s651_s19, %s868_s1 }
   0x7   :  { %p657_p2 = pnand %p655_p1, %p652_p0 }
   0x9   :  { %660 = shalt.err (!%p657_p2)
}
   0xa   :  { %s661_s24 = scalar_lea.vmem %s30_s16, 2048  ;;  %p666_p4 = scmp.lt.s32.totalorder %s30_s16, %s30_s16 }
   0xb   :  { %p662_p3 = scmp.ne.s32.totalorder %s30_s16, %s661_s24  ;;  %p667_p5 = scmp.lt.s32.totalorder %s661_s24, %s661_s24 }
   0xd   :  { %p668_p6 = por %p667_p5, %p666_p4 }
   0xf   :  { %p669_p7 = pnand %p668_p6, %p662_p3 }
  0x11   :  { %672 = shalt.err (!%p669_p7)
}
  0x12   :  { %s746_s25 = smov 64   ;;  %s747_s26 = smov 4  }
  0x13   :  { %35 = dma.hbm_to_vmem [thread:$0]  %s868_s1, 2048, %s30_s16, [#allocation6], %s746_s25, %s746_s25, %s747_s26  }
  0x14   :  { %s748_s29 = smov [#allocation2]   ;;  %s673_s7 = scalar_lea.hbm %s867_s0, 32 }
  0x15   :  { %s17_s30 = sshll.u32 %s748_s29, 4  ;;  %p674_p8 = scmp.ne.s32.totalorder %s867_s0, %s673_s7  ;;  %s18_s30 = int_to_ptr.vmem [resolvable:$true] %s17_s30 }
  0x16   :  { %p677_p9 = scmp.lt.u32.totalorder %s673_s7, %s867_s0 }
  0x18   :  { %p679_p10 = pnand %p677_p9, %p674_p8 }
  0x1a   :  { %682 = shalt.err (!%p679_p10)
}
  0x1b   :  { %s683_s12 = scalar_lea.vmem %s18_s30, 32  ;;  %s687_s1 = scalar_lea.vmem %s18_s30, 256 }
  0x1c   :  { %p684_p11 = scmp.ne.s32.totalorder %s18_s30, %s683_s12  ;;  %p688_p12 = scmp.lt.s32.totalorder %s18_s30, %s18_s30 }
  0x1d   :  { %p689_p13 = scmp.lt.s32.totalorder %s687_s1, %s683_s12 }
  0x1f   :  { %p690_p0 = por %p689_p13, %p688_p12 }
  0x21   :  { %p691_p1 = pnand %p690_p0, %p684_p11 }
  0x23   :  { %694 = shalt.err (!%p691_p1)
}
  0x24   :  { %s749_s13 = smov 32   ;;  %s750_s14 = smov 2  }
  0x25   :  { %23 = dma.hbm_to_vmem [thread:$0]  %s867_s0, 32, %s18_s30, [#allocation3], %s749_s13, %s749_s13, %s750_s14  }
  0x26   :  { %s751_s17 = smov [#allocation7]   ;;  %s695_s21 = scalar_lea.hbm %s869_s2, 1024 }
  0x27   :  { %s41_s18 = sshll.u32 %s751_s17, 4  ;;  %p696_p2 = scmp.ne.s32.totalorder %s869_s2, %s695_s21  ;;  %s42_s18 = int_to_ptr.vmem [resolvable:$true] %s41_s18 }
  0x28   :  { %p699_p3 = scmp.lt.u32.totalorder %s695_s21, %s869_s2 }
  0x2a   :  { %p701_p4 = pnand %p699_p3, %p696_p2 }
  0x2c   :  { %704 = shalt.err (!%p701_p4)
}
  0x2d   :  { %s705_s28 = scalar_lea.vmem %s42_s18, 1024  ;;  %p710_p6 = scmp.lt.s32.totalorder %s42_s18, %s42_s18 }
  0x2e   :  { %p706_p5 = scmp.ne.s32.totalorder %s42_s18, %s705_s28  ;;  %p711_p7 = scmp.lt.s32.totalorder %s705_s28, %s705_s28 }
  0x30   :  { %p712_p8 = por %p711_p7, %p710_p6 }
  0x32   :  { %p713_p9 = pnand %p712_p8, %p706_p5 }
  0x34   :  { %716 = shalt.err (!%p713_p9)
}
  0x35   :  { %47 = dma.hbm_to_vmem [thread:$0]  %s869_s2, 1024, %s42_s18, [#allocation6], %s746_s25, %s746_s25, %s747_s26  }
  0x36   :  { %739 = dma.done.wait [#allocation3], 256  }
  0x37   :  { %740 = vsyncadd [#allocation3], 4294967040 }
  0x38   :  { %741 = dma.done.wait [#allocation6], 3072  }
  0x39   :  { %742 = vsyncadd [#allocation6], 4294964224  ;;  %v619_v0 = vld [vmem:[#allocation5 + $0x40] sm:$0xff]   ;;  %v621_v2 = vld [vmem:[#allocation5 + $0x48] sm:$0xff]   ;;  %v101_v6 = vlaneseq  ;;  %v752_v7 = vmov 1966171168  }
  0x3a   :  { %v620_v1 = vld [vmem:[#allocation5] sm:$0xff]   ;;  %557 = vmatprep.subr.bf16.mxu0 %v619_v0  ;;  %v622_v3 = vld [vmem:[#allocation5 + $0x8] sm:$0xff]   ;;  %v623_v4 = vld [vmem:[#allocation5 + $0x50] sm:$0xff]   ;;  %v118_v8 = vunpack.c.l.s4 %v752_v7  ;;  %v753_v62 = vmov 0.0   ;;  %vm754_vm0 = vmmov 0  }
  0x3b   :  { %558 = vmatpush3.bf16.msra.mxu0 %v620_v1  ;;  %v624_v5 = vld [vmem:[#allocation5 + $0x10] sm:$0xff]   ;;  %v625_v9 = vld [vmem:[#allocation5 + $0x58] sm:$0xff]   ;;  %v826_v11 = vshrl.u32 %v101_v6, 7  ;;  %v627_v13 = vld [vmem:[#allocation5 + $0x60] sm:$0xff]   ;;  %588 = vmatprep.subr.bf16.mxu1 %v753_v62 }
  0x3c   :  { %559 = vmatprep.subr.bf16.mxu0 %v621_v2  ;;  %v626_v10 = vld [vmem:[#allocation5 + $0x18] sm:$0xff]   ;;  %v119_v12 = vunpack.c.0.s8 %v118_v8  ;;  %v628_v14 = vld [vmem:[#allocation5 + $0x20] sm:$0xff]   ;;  %v629_v15 = vld [vmem:[#allocation5 + $0x68] sm:$0xff]   ;;  %604 = vmatprep.mubr.msk.bf16.mxu1 %vm754_vm0, %v753_v62 }
  0x3d   :  { %v60_v17 = vld [vmem:[#allocation2] sm:$0x3]  ;;  %v61_v18 = vld [vmem:[#allocation2 + $0x2] sm:$0x3]  ;;  %v62_v19 = vld [vmem:[#allocation2 + $0x4] sm:$0x3] }
  0x3e   :  { %v122_v16 = vsub.s32 %v119_v12, %v826_v11  ;;  %v630_v20 = vld [vmem:[#allocation5 + $0x28] sm:$0xff]   ;;  %v63_v21 = vld [vmem:[#allocation2 + $0x6] sm:$0x3]  ;;  %v64_v22 = vld [vmem:[#allocation2 + $0x8] sm:$0x3]  ;;  %v113_v24 = vcombine.low %v60_v17, %v61_v18  ;;  %v103_v48 = vsub.s32 0, %v826_v11 }
  0x3f   :  { %560 = vmatpush3.bf16.msra.mxu0 %v622_v3  ;;  %v65_v23 = vld [vmem:[#allocation2 + $0xa] sm:$0x3]  ;;  %v631_v25 = vld [vmem:[#allocation5 + $0x70] sm:$0xff]   ;;  %v66_v26 = vld [vmem:[#allocation2 + $0xc] sm:$0x3]  ;;  %v114_v28 = vcombine.low %v62_v19, %v63_v21 }
  0x40   :  { %561 = vmatprep.subr.bf16.mxu0 %v623_v4  ;;  %v67_v27 = vld [vmem:[#allocation2 + $0xe] sm:$0x3]  ;;  %v115_v29 = vcombine.low %v64_v22, %v65_v23  ;;  %v123_v31 = vrot.slane %v113_v24, %v122_v16  ;;  %v632_v34 = vld [vmem:[#allocation5 + $0x30] sm:$0xff]   ;;  %v833_v49 = vld [vmem:[%s870_s3] sm:$0xff]  ;;  %v347_v23 = vsub.s32 1, %v826_v11 }
  0x41   :  { %v116_v30 = vcombine.low %v66_v26, %v67_v27  ;;  %v130_v32 = vrot.slane %v114_v28, %v122_v16  ;;  %v633_v40 = vld [vmem:[#allocation5 + $0x78] sm:$0xff]   ;;  %v104_v51 = vrot.slane %v833_v49, %v103_v48  ;;  %v635_v61 = vld [vmem:[#allocation7] sm:$0xff]   ;;  %v636_v63 = vld [vmem:[#allocation7 + $0x8] sm:$0xff]  }
  0x42   :  { %v137_v33 = vrot.slane %v115_v29, %v122_v16  ;;  %v634_v45 = vld [vmem:[#allocation5 + $0x38] sm:$0xff]   ;;  %589 = vmatpush3.bf16.msra.mxu1 %v635_v61  ;;  %v637_v0 = vld [vmem:[#allocation7 + $0x10] sm:$0xff]   ;;  %v639_v2 = vld [vmem:[#allocation7 + $0x20] sm:$0xff]   ;;  %v348_v24 = vrot.slane %v833_v49, %v347_v23 }
  0x43   :  { %562 = vmatpush3.bf16.msra.mxu0 %v624_v5  ;;  %v144_v35 = vrot.slane %v116_v30, %v122_v16  ;;  %v146_v36 = vcombine.high %v123_v31, %v130_v32  ;;  %v145_v37 = vcombine.low %v123_v31, %v130_v32  ;;  %590 = vmatprep.subr.bf16.mxu1 %v753_v62  ;;  %v638_v1 = vld [vmem:[#allocation7 + $0x18] sm:$0xff]   ;;  %v640_v3 = vld [vmem:[#allocation7 + $0x28] sm:$0xff]   ;;  %v641_v4 = vld [vmem:[#allocation7 + $0x30] sm:$0xff]  }
  0x44   :  { %563 = vmatprep.subr.bf16.mxu0 %v625_v9  ;;  %v642_v5 = vld [vmem:[#allocation7 + $0x38] sm:$0xff]  }
  0x45   :  { %v148_v38 = vcombine.high %v137_v33, %v144_v35  ;;  %v147_v39 = vcombine.low %v137_v33, %v144_v35  ;;  %v162_v41 = vrot.slane %v146_v36, %v122_v16  ;;  %v155_v43 = vrot.slane %v145_v37, %v122_v16 }
  0x46   :  { %591 = vmatpush3.bf16.msra.mxu1 %v636_v63 }
  0x47   :  { %564 = vmatpush3.bf16.msra.mxu0 %v626_v10  ;;  %v176_v42 = vrot.slane %v148_v38, %v122_v16  ;;  %v169_v44 = vrot.slane %v147_v39, %v122_v16  ;;  %592 = vmatprep.subr.bf16.mxu1 %v753_v62 }
  0x48   :  { %565 = vmatprep.subr.bf16.mxu0 %v627_v13 }
  0x49   :  { %v178_v46 = vcombine.low %v162_v41, %v176_v42  ;;  %v177_v47 = vcombine.low %v155_v43, %v169_v44 }
  0x4a   :  { %593 = vmatpush3.bf16.msra.mxu1 %v637_v0 }
  0x4b   :  { %566 = vmatpush3.bf16.msra.mxu0 %v628_v14  ;;  %309 = vmatprep.mubr.bf16.mxu0 %v178_v46 }
  0x4c   :  { %567 = vmatprep.subr.bf16.mxu0 %v629_v15  ;;  %594 = vmatprep.subr.bf16.mxu1 %v753_v62 }
  0x4e   :  { %595 = vmatpush3.bf16.msra.mxu1 %v638_v1 }
  0x4f   :  { %568 = vmatpush3.bf16.msra.mxu0 %v630_v20  ;;  %596 = vmatprep.subr.bf16.mxu1 %v753_v62 }
  0x50   :  { %569 = vmatprep.subr.bf16.mxu0 %v631_v25  ;;  %v355_v25 = vsub.s32 2, %v826_v11 }
  0x52   :  { %597 = vmatpush3.bf16.msra.mxu1 %v639_v2  ;;  %v356_v30 = vrot.slane %v833_v49, %v355_v25 }
  0x53   :  { %570 = vmatpush3.bf16.msra.mxu0 %v632_v34  ;;  %598 = vmatprep.subr.bf16.mxu1 %v753_v62 }
  0x54   :  { %571 = vmatprep.subr.bf16.mxu0 %v633_v40  ;;  %v380_v40 = vsub.s32 3, %v826_v11 }
  0x56   :  { %599 = vmatpush3.bf16.msra.mxu1 %v640_v3  ;;  %v381_v41 = vrot.slane %v833_v49, %v380_v40  ;;  %v499_v3 = vsub.s32 4, %v826_v11 }
  0x57   :  { %572 = vmatpush3.bf16.msra.mxu0 %v634_v45  ;;  %600 = vmatprep.subr.bf16.mxu1 %v753_v62 }
  0x5a   :  { %310 = vmatmul.mubr.bf16.vlgmr.msra.gmra.mrb[0].mxu0 %v177_v47  ;;  %601 = vmatpush3.bf16.msra.mxu1 %v641_v4  ;;  %v500_v4 = vrot.slane %v833_v49, %v499_v3 }
  0x5b   :  { %602 = vmatprep.subr.bf16.mxu1 %v753_v62 }
  0x5e   :  { %603 = vmatpush3.bf16.msra.mxu1 %v642_v5  ;;  %v507_v5 = vsub.s32 5, %v826_v11 }
 0x12d   :  { %v573_v50 = vpop.f32.mrb[0].mxu0 }
 0x12e   :  { %v574_v52 = vpop.f32.mrb[1].mxu0 }
 0x12f   :  { %v575_v53 = vadd.f32 %v574_v52, %v573_v50  ;;  %v576_v54 = vpop.f32.mrb[2].mxu0 }
 0x130   :  { %v577_v55 = vpop.f32.mrb[3].mxu0 }
 0x131   :  { %v312_v56 = vadd.f32 %v575_v53, %v104_v51  ;;  %v578_v57 = vadd.f32 %v577_v55, %v576_v54 }
 0x133   :  { %v836_v58 = vadd.f32 %v578_v57, %v104_v51  ;;  %318 = vadd.xlane.f32.xlu0 %v312_v56  ;;  %v325_v59 = vmul.f32 %v312_v56, %v312_v56 }
 0x135   :  { %327 = vadd.xlane.f32.xlu1 %v325_v59  ;;  %v326_v60 = vmul.f32 %v836_v58, %v836_v58 }
 0x137   :  { %320 = vadd.xlane.f32.xlu0 %v836_v58 }
 0x139   :  { %329 = vadd.xlane.f32.xlu1 %v326_v60 }
 0x1c0   :  { %v319_v6 = vpop.xlane.xlu0 %318 }
 0x1c1   :  { %v323_v7 = vmul.f32 0.0078125, %v319_v6 }
 0x1c2   :  { %v328_v8 = vpop.xlane.xlu1 %327 }
 0x1c3   :  { %v333_v9 = vmul.f32 %v323_v7, %v323_v7  ;;  %v331_v10 = vmul.f32 0.0078125, %v328_v8  ;;  %v343_v27 = vsub.f32 %v312_v56, %v323_v7  ;;  %v508_v8 = vrot.slane %v833_v49, %v507_v5 }
 0x1c4   :  { %v321_v12 = vpop.xlane.xlu0 %320 }
 0x1c5   :  { %v335_v13 = vsub.f32 %v331_v10, %v333_v9  ;;  %v324_v14 = vmul.f32 0.0078125, %v321_v12 }
 0x1c6   :  { %v330_v15 = vpop.xlane.xlu1 %329 }
 0x1c7   :  { %v337_v16 = vmax.f32 %v335_v13, 0.0  ;;  %v334_v17 = vmul.f32 %v324_v14, %v324_v14  ;;  %v332_v18 = vmul.f32 0.0078125, %v330_v15  ;;  %v344_v32 = vsub.f32 %v836_v58, %v324_v14 }
 0x1c9   :  { %v339_v19 = vadd.f32 1e-05, %v337_v16  ;;  %v336_v20 = vsub.f32 %v332_v18, %v334_v17 }
 0x1cb   :  { %643 = vrsqrt.f32 %v339_v19  ;;  %v338_v21 = vmax.f32 %v336_v20, 0.0 }
 0x1cd   :  { %v340_v22 = vadd.f32 1e-05, %v338_v21 }
 0x1cf   :  { %645 = vrsqrt.f32 %v340_v22 }
 0x1d5   :  { %v644_v26 = vpop.eup %643 }
 0x1d6   :  { %v349_v28 = vmul.f32 %v644_v26, %v348_v24 }
 0x1d8   :  { %v351_v29 = vmul.f32 %v349_v28, %v343_v27 }
 0x1d9   :  { %v646_v31 = vpop.eup %645 }
 0x1da   :  { %v350_v33 = vmul.f32 %v646_v31, %v348_v24  ;;  %v357_v35 = vadd.f32 %v356_v30, %v351_v29 }
 0x1dc   :  { %v352_v34 = vmul.f32 %v350_v33, %v344_v32  ;;  %v359_v37 = vmax.f32 %v357_v35, 0.0 }
 0x1de   :  { %v358_v36 = vadd.f32 %v356_v30, %v352_v34 }
 0x1e0   :  { %v360_v38 = vmax.f32 %v358_v36, 0.0 }
 0x1e2   :  { %v361_v39 = vpack.c.bf16 %v360_v38, %v359_v37 }
 0x1e4   :  { %605 = vmatmul.mubr.bf16.vlgmr.msra.gmra.mrb[0].mxu1 %v361_v39 }
 0x2b7   :  { %v464_v42 = vpop.f32.mrb[0].mxu1 }
 0x2b8   :  { %v465_v43 = vadd.f32 %v464_v42, %v381_v41  ;;  %v606_v44 = vpop.f32.mrb[1].mxu1 }
 0x2b9   :  { %v467_v45 = vpop.f32.mrb[2].mxu1 }
 0x2ba   :  { %v468_v46 = vadd.f32 %v467_v45, %v381_v41  ;;  %471 = vadd.xlane.f32.xlu0 %v465_v43  ;;  %v607_v47 = vpop.f32.mrb[3].mxu1  ;;  %v477_v48 = vmul.f32 %v465_v43, %v465_v43 }
 0x2bc   :  { %473 = vadd.xlane.f32.xlu1 %v468_v46  ;;  %v478_v50 = vmul.f32 %v468_v46, %v468_v46 }
 0x2be   :  { %479 = vadd.xlane.f32.xlu0 %v477_v48 }
 0x2c0   :  { %481 = vadd.xlane.f32.xlu1 %v478_v50 }
 0x347   :  { %v472_v51 = vpop.xlane.xlu0 %471 }
 0x348   :  { %v475_v52 = vmul.f32 0.0078125, %v472_v51 }
 0x349   :  { %v474_v53 = vpop.xlane.xlu1 %473 }
 0x34a   :  { %v476_v54 = vmul.f32 0.0078125, %v474_v53  ;;  %v485_v56 = vmul.f32 %v475_v52, %v475_v52  ;;  %v495_v7 = vsub.f32 %v465_v43, %v475_v52 }
 0x34b   :  { %v480_v55 = vpop.xlane.xlu0 %479 }
 0x34c   :  { %v483_v57 = vmul.f32 0.0078125, %v480_v55  ;;  %v486_v59 = vmul.f32 %v476_v54, %v476_v54  ;;  %v496_v12 = vsub.f32 %v468_v46, %v476_v54 }
 0x34d   :  { %v482_v58 = vpop.xlane.xlu1 %481 }
 0x34e   :  { %v487_v60 = vsub.f32 %v483_v57, %v485_v56  ;;  %v484_v61 = vmul.f32 0.0078125, %v482_v58 }
 0x350   :  { %v489_v62 = vmax.f32 %v487_v60, 0.0  ;;  %v488_v63 = vsub.f32 %v484_v61, %v486_v59 }
 0x352   :  { %v491_v0 = vadd.f32 1e-05, %v489_v62  ;;  %v490_v1 = vmax.f32 %v488_v63, 0.0 }
 0x354   :  { %647 = vrsqrt.f32 %v491_v0  ;;  %v492_v2 = vadd.f32 1e-05, %v490_v1 }
 0x356   :  { %649 = vrsqrt.f32 %v492_v2 }
 0x35e   :  { %v648_v6 = vpop.eup %647 }
 0x35f   :  { %v501_v9 = vmul.f32 %v648_v6, %v500_v4 }
 0x360   :  { %v650_v10 = vpop.eup %649 }
 0x361   :  { %v503_v13 = vmul.f32 %v501_v9, %v495_v7  ;;  %v502_v14 = vmul.f32 %v650_v10, %v500_v4 }
 0x363   :  { %v509_v15 = vadd.f32 %v508_v8, %v503_v13  ;;  %v504_v16 = vmul.f32 %v502_v14, %v496_v12 }
 0x365   :  { %v511_v17 = vmax.f32 %v509_v15, 0.0  ;;  %v510_v18 = vadd.f32 %v508_v8, %v504_v16 }
 0x367   :  { %513 = vst [vmem:[#allocation8] sm:$0xff] %v511_v17  ;;  %v512_v19 = vmax.f32 %v510_v18, 0.0 }
 0x369   :  { %514 = vst [vmem:[#allocation8 + $0x8] sm:$0xff] %v512_v19 }
 0x36a   :  { %519 = vsyncadd [#allocation4], 224  ;;  %s755_s3 = smov [#allocation8]  }
 0x36b   :  { %s520_s26 = sshll.u32 %s755_s3, 4  ;;  %s521_s26 = int_to_ptr.vmem [resolvable:$true] %s520_s26 }
 0x36c   :  { %s717_s30 = scalar_lea.vmem %s521_s26, 32  ;;  %s721_s5 = scalar_lea.vmem %s521_s26, 256 }
 0x36d   :  { %p718_p10 = scmp.ne.s32.totalorder %s521_s26, %s717_s30  ;;  %p722_p11 = scmp.lt.s32.totalorder %s521_s26, %s521_s26 }
 0x36e   :  { %p723_p12 = scmp.lt.s32.totalorder %s721_s5, %s717_s30 }
 0x370   :  { %p724_p13 = por %p723_p12, %p722_p11 }
 0x372   :  { %p725_p0 = pnand %p724_p13, %p718_p10 }
 0x374   :  { %728 = shalt.err (!%p725_p0)
}
 0x375   :  { %s729_s8 = scalar_lea.hbm %s871_s4, 32 }
 0x376   :  { %p730_p1 = scmp.ne.s32.totalorder %s871_s4, %s729_s8  ;;  %p733_p2 = scmp.lt.u32.totalorder %s729_s8, %s871_s4 }
 0x378   :  { %p735_p3 = pnand %p733_p2, %p730_p1 }
 0x37a   :  { %738 = shalt.err (!%p735_p3)
}
 0x37b   :  { %526 = dma.vmem_to_hbm [thread:$0]  %s521_s26, 32, %s871_s4, [#allocation4], %s749_s13, %s749_s13, %s750_s14  }
 0x37c   :  { %743 = dma.done.wait [#allocation4], 256  }
 0x37d   :  { %744 = vsyncadd [#allocation4], 4294967040 }
 0x37e   :  { %530 = vsyncpa [#allocation3], 1 }
 0x37f   :  { %531 = vsyncpa [#allocation6], 1 }
 0x380   :  { %532 = vsyncpa [#allocation4], 1 }

</bundles_post_ra>
